<compile_context>
chip_gen: v6e
topology: v6e:2x2x1
jax: 0.10.0
libtpu: 0.0.40
codegen_flags: <defaults>
</compile_context>

<pallas_src>
import jax
import jax.numpy as jnp
from jax.experimental import pallas as pl
from jax.experimental.pallas import tpu as pltpu


def mnl_kernel(w_ref, xT_ref, ids_col_ref, ids_row_ref, out_ref):
    w = w_ref[...]                 # (1, D) f32
    xT = xT_ref[...]               # (D, N) f32
    ids_col = ids_col_ref[...]     # (N, 1) i32
    ids_row = ids_row_ref[...]     # (1, N) i32

    # Lane-dense utilities straight off the MXU: (1, D) @ (D, N) -> (1, N).
    u_row = jnp.dot(w, xT, preferred_element_type=jnp.float32) + 2.0   # (1, N)

    # same[i, j] = rows i and j belong to the same session. Diagonal is always
    # True, so every segment is non-empty and seg_max below is finite.
    same = ids_col == ids_row                                          # (N, N) bool

    # Per-segment max (numerically stable softmax). One lane-reduce gives it
    # keyed by row (column vector); a single tiny (N,1)->(1,N) relayout brings
    # it back into the lane-dense form the rest of the kernel uses.
    seg_max_col = jnp.max(jnp.where(same, u_row, -jnp.inf),
                          axis=1, keepdims=True)                       # (N, 1)
    seg_max_row = seg_max_col.T                                        # (1, N)

    # O(N) transcendentals: one exp per element. Rows within a segment share
    # seg_max, so exp(u_j - seg_max_i) == p_j for every same-segment pair and
    # the result is identical to the O(N^2)-exp formulation.
    p_row = jnp.exp(u_row - seg_max_row)                               # (1, N)

    # Segment sums on the MXU: seg_sum[j] = sum_i same[i, j] * p[i].
    same_f32 = jnp.where(same, 1.0, 0.0)                               # (N, N) f32
    seg_sum_row = jnp.dot(p_row, same_f32,
                          preferred_element_type=jnp.float32)          # (1, N)

    # EUP approximate reciprocal + one Newton-Raphson step (~f32 accurate),
    # keeping the divide off the VALU path.
    r = pl.reciprocal(seg_sum_row, approx=True)
    r = r * (2.0 - seg_sum_row * r)

    # Lane-dense (1, N) store; the wrapper reshapes back to (N, 1).
    out_ref[...] = p_row * r


def mnl_forward(x, w, ids):
    """x: (N, D) f32, w: (1, D) f32, ids: (N,) int32 (sorted contiguous groups)."""
    N, D = x.shape
    xT = jnp.asarray(x, jnp.float32).T                 # (D, N)  layout plumbing
    w_row = jnp.asarray(w, jnp.float32).reshape(1, D)  # (1, D)
    ids_col = jnp.asarray(ids, jnp.int32).reshape(N, 1)
    ids_row = jnp.asarray(ids, jnp.int32).reshape(1, N)

    out_row = pl.pallas_call(
        mnl_kernel,
        out_shape=jax.ShapeDtypeStruct((1, N), jnp.float32),
        grid=(1,),
        in_specs=[
            pl.BlockSpec((1, D), lambda i: (0, 0)),
            pl.BlockSpec((D, N), lambda i: (0, 0)),
            pl.BlockSpec((N, 1), lambda i: (0, 0)),
            pl.BlockSpec((1, N), lambda i: (0, 0)),
        ],
        out_specs=pl.BlockSpec((1, N), lambda i: (0, 0)),
        compiler_params=pltpu.CompilerParams(
            dimension_semantics=("arbitrary",),
            vmem_limit_bytes=32 * 1024 * 1024,
        ),
    )(w_row, xT, ids_col, ids_row)

    return out_row.reshape(N, 1)


def mnl_reference(x, w, ids):
    """Plain-JAX reference: segmented softmax over same-id rows."""
    u = x @ w.T + 2.0                                # (N, 1)
    same = ids[:, None] == ids[None, :]              # (N, N)
    u_row = u.T                                      # (1, N)
    seg_max = jnp.max(jnp.where(same, u_row, -jnp.inf), axis=1, keepdims=True)
    seg_sum = jnp.sum(jnp.where(same, jnp.exp(u_row - seg_max), 0.0),
                      axis=1, keepdims=True)
    return jnp.exp(u - seg_max) / seg_sum


if __name__ == "__main__":
    # Small shapes consistent with the module: N rows (alternatives), D features.
    N, D = 16, 8
    feature_list = [f"feat_{i}" for i in range(D)]   # input_dim = len(feature_list)

    key = jax.random.PRNGKey(0)
    kx, kw = jax.random.split(key)

    x = jax.random.normal(kx, (N, D), dtype=jnp.float32)

    # Deterministic Linear(D, 1, bias=False) weight, PyTorch-style U(-1/sqrt(D), 1/sqrt(D)).
    bound = 1.0 / (D ** 0.5)
    w = jax.random.uniform(kw, (1, D), dtype=jnp.float32, minval=-bound, maxval=bound)

    # Session ids: sorted, contiguous groups (as torch.unique + torch.split assumes).
    ids = jnp.array([0, 0, 0, 0, 1, 1, 2, 2, 2, 2, 2, 3, 3, 3, 3, 3], dtype=jnp.int32)

    out = mnl_forward(x, w, ids)
    out = jax.block_until_ready(out)

    ref = mnl_reference(x, w, ids)
    assert out.shape == (N, 1)
    assert jnp.allclose(out, ref, atol=1e-4, rtol=1e-4), "mismatch vs reference"
    # Each session's probabilities should sum to 1.
    assert jnp.allclose(
        jax.ops.segment_sum(out[:, 0], ids, num_segments=4), jnp.ones((4,)), atol=1e-4
    )

    print("KERNEL_OK")
</pallas_src>

<mosaic_0001>
module attributes {stable_mosaic.version = 11 : i64} {
  func.func @mnl_kernel(%arg0: i32, %arg1: memref<1x8xf32, #tpu.memory_space<vmem>>, %arg2: memref<8x16xf32, #tpu.memory_space<vmem>>, %arg3: memref<16x1xi32, #tpu.memory_space<vmem>>, %arg4: memref<1x16xi32, #tpu.memory_space<vmem>>, %arg5: memref<1x16xf32, #tpu.memory_space<vmem>>) attributes {dimension_semantics = [#tpu.dimension_semantics<arbitrary>], iteration_bounds = array<i64: 1>, scalar_prefetch = 0 : i64, scratch_operands = 0 : i64, tpu.core_type = #tpu.core_type<tc>, window_params = [{pipeline_mode = #tpu.pipeline_mode<synchronous>, transform_indices = @transform_0, window_bounds = array<i64: 1, 8>}, {pipeline_mode = #tpu.pipeline_mode<synchronous>, transform_indices = @transform_1, window_bounds = array<i64: 8, 16>}, {pipeline_mode = #tpu.pipeline_mode<synchronous>, transform_indices = @transform_2, window_bounds = array<i64: 16, 1>}, {pipeline_mode = #tpu.pipeline_mode<synchronous>, transform_indices = @transform_3, window_bounds = array<i64: 1, 16>}, {pipeline_mode = #tpu.pipeline_mode<synchronous>, transform_indices = @transform_4, window_bounds = array<i64: 1, 16>}]} {
    %c0 = arith.constant 0 : index
    %c0_0 = arith.constant 0 : index
    %0 = vector.load %arg1[%c0, %c0_0] : memref<1x8xf32, #tpu.memory_space<vmem>>, vector<1x8xf32>
    %c0_1 = arith.constant 0 : index
    %c0_2 = arith.constant 0 : index
    %1 = vector.load %arg2[%c0_1, %c0_2] : memref<8x16xf32, #tpu.memory_space<vmem>>, vector<8x16xf32>
    %c0_3 = arith.constant 0 : index
    %c0_4 = arith.constant 0 : index
    %2 = vector.load %arg3[%c0_3, %c0_4] : memref<16x1xi32, #tpu.memory_space<vmem>>, vector<16x1xi32>
    %c0_5 = arith.constant 0 : index
    %c0_6 = arith.constant 0 : index
    %3 = vector.load %arg4[%c0_5, %c0_6] : memref<1x16xi32, #tpu.memory_space<vmem>>, vector<1x16xi32>
    %cst = arith.constant dense<0.000000e+00> : vector<1x16xf32>
    %4 = tpu.matmul %0, %1, %cst {dimension_numbers = #tpu.dot_dimension_numbers<[1], [0], [0], [1], [0, 0, 1, 1], [], []>} : vector<1x8xf32>, vector<8x16xf32>, vector<1x16xf32> -> vector<1x16xf32>
    %cst_7 = arith.constant 2.000000e+00 : f32
    %5 = vector.broadcast %cst_7 : f32 to vector<1x16xf32>
    %6 = arith.addf %4, %5 : vector<1x16xf32>
    %7 = vector.broadcast %2 : vector<16x1xi32> to vector<16x16xi32>
    %8 = vector.broadcast %3 : vector<1x16xi32> to vector<16x16xi32>
    %9 = arith.cmpi eq, %7, %8 : vector<16x16xi32>
    %cst_8 = arith.constant 0xFF800000 : f32
    %10 = vector.shape_cast %6 : vector<1x16xf32> to vector<1x16xf32>
    %11 = vector.broadcast %10 : vector<1x16xf32> to vector<16x16xf32>
    %12 = vector.broadcast %cst_8 : f32 to vector<16x16xf32>
    %13 = arith.select %9, %11, %12 : vector<16x16xi1>, vector<16x16xf32>
    %cst_9 = arith.constant dense<0xFF800000> : vector<16xf32>
    %14 = vector.multi_reduction <maximumf>, %13, %cst_9 [1] : vector<16x16xf32> to vector<16xf32>
    %15 = vector.shape_cast %14 : vector<16xf32> to vector<16x1xf32>
    %16 = tpu.transpose %15, [1, 0] : vector<16x1xf32> -> vector<1x16xf32>
    %17 = arith.subf %6, %16 : vector<1x16xf32>
    %18 = math.exp %17 : vector<1x16xf32>
    %cst_10 = arith.constant 1.000000e+00 : f32
    %cst_11 = arith.constant 0.000000e+00 : f32
    %19 = vector.broadcast %cst_10 : f32 to vector<16x16xf32>
    %20 = vector.broadcast %cst_11 : f32 to vector<16x16xf32>
    %21 = arith.select %9, %19, %20 : vector<16x16xi1>, vector<16x16xf32>
    %cst_12 = arith.constant dense<0.000000e+00> : vector<1x16xf32>
    %22 = tpu.matmul %18, %21, %cst_12 {dimension_numbers = #tpu.dot_dimension_numbers<[1], [0], [0], [1], [0, 0, 1, 1], [], []>} : vector<1x16xf32>, vector<16x16xf32>, vector<1x16xf32> -> vector<1x16xf32>
    %23 = tpu.reciprocal %22 {approx = true} : vector<1x16xf32> -> vector<1x16xf32>
    %24 = arith.mulf %22, %23 : vector<1x16xf32>
    %cst_13 = arith.constant 2.000000e+00 : f32
    %25 = vector.broadcast %cst_13 : f32 to vector<1x16xf32>
    %26 = arith.subf %25, %24 : vector<1x16xf32>
    %27 = arith.mulf %23, %26 : vector<1x16xf32>
    %28 = arith.mulf %18, %27 : vector<1x16xf32>
    %c0_14 = arith.constant 0 : index
    %c0_15 = arith.constant 0 : index
    %29 = vector.load %arg5[%c0_14, %c0_15] : memref<1x16xf32, #tpu.memory_space<vmem>>, vector<1x16xf32>
    tpu.vector_store %arg5[%c0_14, %c0_15], %28 {strides = array<i32>} : memref<1x16xf32, #tpu.memory_space<vmem>>, vector<1x16xf32>,
    return
  }
  func.func @transform_0(%arg0: i32) -> (i32, i32) {
    %c0_i32 = arith.constant 0 : i32
    %c0_i32_0 = arith.constant 0 : i32
    %c0_i32_1 = arith.constant 0 : i32
    return %c0_i32, %c0_i32_0 : i32, i32
  }
  func.func @transform_1(%arg0: i32) -> (i32, i32) {
    %c0_i32 = arith.constant 0 : i32
    %c0_i32_0 = arith.constant 0 : i32
    %c0_i32_1 = arith.constant 0 : i32
    return %c0_i32, %c0_i32_0 : i32, i32
  }
  func.func @transform_2(%arg0: i32) -> (i32, i32) {
    %c0_i32 = arith.constant 0 : i32
    %c0_i32_0 = arith.constant 0 : i32
    %c0_i32_1 = arith.constant 0 : i32
    return %c0_i32, %c0_i32_0 : i32, i32
  }
  func.func @transform_3(%arg0: i32) -> (i32, i32) {
    %c0_i32 = arith.constant 0 : i32
    %c0_i32_0 = arith.constant 0 : i32
    %c0_i32_1 = arith.constant 0 : i32
    return %c0_i32, %c0_i32_0 : i32, i32
  }
  func.func @transform_4(%arg0: i32) -> (i32, i32) {
    %c0_i32 = arith.constant 0 : i32
    %c0_i32_0 = arith.constant 0 : i32
    %c0_i32_1 = arith.constant 0 : i32
    return %c0_i32, %c0_i32_0 : i32, i32
  }
}

</mosaic_0001>

<bundles_post_ra>
// kernel: tpu_custom_call.1
= control target key start
LH: loop header
LB: loop body
LE: loop exit
PB: predicated region body
PF: predicated region fallthrough
CT: control target
= control target key end

     0   :  { %vm23_vm0 = vcmask 64512   ;;  %v307_v2 = vmov 0.0   ;;  %vm308_vm1 = vmmov 0   ;;  %v309_v4 = vmov 0   ;;  %s360_s0 = inlined_call_operand.vmem [shape: f32[1,8], index: 0, kind: input, shape index: {}]   ;;  %s361_s1 = inlined_call_operand.vmem [shape: f32[8,16], index: 1, kind: input, shape index: {}]   ;;  %s362_s2 = inlined_call_operand.vmem [shape: s32[16,1], index: 2, kind: input, shape index: {}]   ;;  %s363_s3 = inlined_call_operand.vmem [shape: s32[1,16], index: 3, kind: input, shape index: {}]   ;;  %s364_s4 = inlined_call_operand.hbm [shape: f32[1,16], index: 4, kind: output, shape index: {}]  }
   0x1   :  { %v19_v0 = vld [vmem:[%s361_s1] sm:$0xff]  ;;  %263 = vmatprep.subr.mxu0 %v307_v2  ;;  %265 = vmatprep.mubr.msk.f32.mxu0 %vm308_vm1, %v307_v2 }
   0x2   :  { %v18_v1 = vld [vmem:[%s360_s0] sm:$0x1]  ;;  %264 = vmatpush3.msra.mxu0 %v19_v0  ;;  %280 = vset.pattern.permute.xlu0 %v309_v4 }
   0x3   :  { %v20_v3 = vld [vmem:[%s362_s2] sm:$0xff] }
   0x4   :  { %9 = vsyncpa [#allocation3], 0  ;;  %266 = vmatmul.mubr.msk.f32.vlgmr.msra.gmra.mxu0 %vm23_vm0, %v18_v1  ;;  %98 = vperm.xlu0 %280, %v20_v3   ;;  %v21_v5 = vld [vmem:[%s362_s2 + $0x8] sm:$0xff]  ;;  %v254_v7 = vld [vmem:[%s363_s3] ss:$0 sm:$0xff]  ;;  %v310_v9 = vmov 1.0   ;;  %v109_v10 = vlaneseq }
   0x5   :  { %268 = vmatprep.subr.mxu1 %v307_v2  ;;  %272 = vmatprep.mubr.msk.f32.mxu1 %vm308_vm1, %v307_v2  ;;  %vm115_vm4 = vcmask 130048   ;;  %s311_s2 = smov [#allocation2]   ;;  %vm237_vm5 = vcmask 122880  }
   0x6   :  { %v110_v11 = vshrl.u32 %v109_v10, 7  ;;  %s245_s3 = sshll.u32 %s311_s2, 4  ;;  %s246_s3 = int_to_ptr.vmem [resolvable:$true] %s245_s3 }
   0x7   :  { %s285_s23 = scalar_lea.vmem %s246_s3, 16  ;;  %s289_s24 = scalar_lea.vmem %s246_s3, 32 }
   0x8   :  { %101 = vperm.xlu0 %280, %v21_v5   ;;  %v111_v12 = vsub.s32 0, %v110_v11  ;;  %p286_p0 = scmp.ne.s32.totalorder %s246_s3, %s285_s23  ;;  %p290_p1 = scmp.lt.s32.totalorder %s246_s3, %s246_s3 }
   0x9   :  { %p291_p2 = scmp.lt.s32.totalorder %s289_s24, %s285_s23 }
   0xb   :  { %p292_p3 = por %p291_p2, %p290_p1 }
   0xd   :  { %p293_p4 = pnand %p292_p3, %p286_p0 }
  0x7f   :  { %v99_v6 = vpop.permute.xlu0 %98 }
  0x80   :  { %vm107_vm2 = vcmp.eq.s32.totalorder %v99_v6, %v254_v7 }
  0x83   :  { %v102_v8 = vpop.permute.xlu0 %101 }
  0x84   :  { %vm108_vm3 = vcmp.eq.s32.totalorder %v102_v8, %v254_v7 }
  0x85   :  { %269 = vmatpush3.msk.msra.mxu1 %vm108_vm3, %v310_v9 }
  0x86   :  { %270 = vmatprep.subr.mxu1 %v307_v2 }
  0x87   :  { %271 = vmatpush3.msk.msra.mxu1 %vm107_vm2, %v310_v9 }
  0xc4   :  { %v93_v13 = vpop.f32.mrf.mxu0 }
  0xc5   :  { %v94_v14 = vadd.f32 2.0, %v93_v13 }
  0xc6   :  { %v267_v15 = vpop.f32.mrf.mxu0 }
  0xc7   :  { %v112_v16 = vrot.slane %v94_v14, %v111_v12 }
  0xc9   :  { %v113_v17 = vsel %vm107_vm2, %v112_v16, -inf  ;;  %v114_v19 = vsel %vm108_vm3, %v112_v16, -inf }
  0xca   :  { %v116_v18 = vsel %vm115_vm4, %v113_v17, -inf  ;;  %v119_v20 = vsel %vm115_vm4, %v114_v19, -inf }
  0xcb   :  { %117 = vmax.xlane.f32.xlu1 %v116_v18 }
  0xcf   :  { %120 = vmax.xlane.f32.xlu1 %v119_v20 }
 0x154   :  { %v118_v21 = vpop.xlane.xlu1 %117 }
 0x155   :  { %122 = vxpose.xlu0.b32.start [1/2] (short) (narrow) %v118_v21, 8 }
 0x158   :  { %v121_v22 = vpop.xlane.xlu1 %120 }
 0x159   :  { %123 = vxpose.xlu0.b32.end [2/2] (short) (narrow) %v121_v22, 8 }
 0x1d1   :  { %v138_v23 = vpop.trf.xlu0 }
 0x1d2   :  { %v154_v24 = vsub.f32 %v94_v14, %v138_v23 }
 0x1d4   :  { %v155_v25 = vmul.f32 1.442695, %v154_v24 }
 0x1d6   :  { %281 = vpow2.f32 %v155_v25 }
 0x1e3   :  { %v282_v26 = vpop.eup %281 }
 0x1e4   :  { %273 = vmatmul.mubr.msk.f32.vlgmr.msra.gmra.mxu1 %vm115_vm4, %v282_v26 }
 0x2a4   :  { %v228_v27 = vpop.f32.mrf.mxu1 }
 0x2a5   :  { %283 = vrcp.f32 %v228_v27 }
 0x2a6   :  { %v274_v28 = vpop.f32.mrf.mxu1 }
 0x2b2   :  { %v284_v29 = vpop.eup %283 }
 0x2b3   :  { %v233_v30 = vmul.f32 %v284_v29, %v228_v27 }
 0x2b5   :  { %v234_v31 = vsub.f32 2.0, %v233_v30 }
 0x2b7   :  { %v235_v32 = vmul.f32 %v284_v29, %v234_v31 }
 0x2b9   :  { %v236_v33 = vmul.f32 %v282_v26, %v235_v32 }
 0x2bb   :  { %238 = vst.msk [vmem:[#allocation2] sm:$0x1] %vm237_vm5, %v236_v33 }
 0x2bc   :  { %296 = shalt.err (!%p293_p4)
}
 0x2bd   :  { %248 = dma.vmem_to_hbm [thread:$0]  %s246_s3, 16, %s364_s4, [#allocation3]  }
 0x2be   :  { %305 = dma.done.wait [#allocation3], 16  }
 0x2bf   :  { %306 = vsyncadd [#allocation3], 4294967280 }
 0x2c0   :  { %252 = vsyncpa [#allocation3], 1 }

</bundles_post_ra>
